<compile_context>
chip_gen: v7x
topology: tpu7x:2x2x1
jax: 0.10.0
libtpu: 0.0.40
codegen_flags: <defaults>
</compile_context>

<pallas_src>
import numpy as np
import jax
import jax.numpy as jnp
from jax.experimental import pallas as pl
from jax.experimental.pallas import tpu as pltpu


def edge_edge_kernel(x_ref, m0_ref, m1_ref,
                     w1x_ref, w1z_ref, g1_ref, b1_ref,
                     w2_ref, g2_ref, b2_ref,
                     o_ref,
                     xb_ref, acc0_ref, acc1_ref):
    i = pl.program_id(0)
    last = pl.num_programs(0) - 1

    @pl.when(i == 0)
    def _init():
        # hoisted: x -> bf16 exactly once (only ever used as an MXU operand below)
        xb_ref[...] = x_ref[...].astype(jnp.bfloat16)
        acc0_ref[...] = jnp.zeros_like(acc0_ref)
        acc1_ref[...] = jnp.zeros_like(acc1_ref)

    # int8 {0,1} map panels -> bf16 MXU operands (exact); 1-byte HBM storage
    m0 = m0_ref[...].astype(jnp.float32).astype(jnp.bfloat16)      # (tm, N)
    m1 = m1_ref[...].astype(jnp.float32).astype(jnp.bfloat16)      # (tm, N)

    xb = xb_ref[...]                                               # (N, H) bf16
    # hop 1 for this row tile:  Z1_i = [M0_i x | M1_i x]
    z10 = jnp.dot(m0, xb, preferred_element_type=jnp.float32)      # (tm, H)
    z11 = jnp.dot(m1, xb, preferred_element_type=jnp.float32)      # (tm, H)
    z1 = jnp.concatenate([z10, z11], axis=-1).astype(jnp.bfloat16)  # (tm, 2H)

    # hop 2, fused into the same pass: M0 and M1 are symmetric, hence
    #   M @ Z1 = sum_i M[rows_i, :]^T @ Z1[rows_i, :]
    # -> each map panel is streamed from HBM exactly once for both hops.
    dn = (((0,), (0,)), ((), ()))
    acc0_ref[...] += jax.lax.dot_general(m0, z1, dn,
                                         preferred_element_type=jnp.float32)
    acc1_ref[...] += jax.lax.dot_general(m1, z1, dn,
                                         preferred_element_type=jnp.float32)

    # TODO(synk): for very large N, split this serial epilogue into a tiled
    # stats-accumulate / apply pass (and stage h through HBM) so the row-tile
    # axis could be marked "parallel" for v7x megacore; negligible at these shapes.
    @pl.when(i == last)
    def _finalize():
        eps = 1e-5
        z2 = jnp.concatenate([acc0_ref[...], acc1_ref[...]], axis=-1)   # (N, 4H)
        # cat([edge_rep, edge2edge_2], -1) @ W1 expressed as 2 block dots (no 5H concat)
        h = (jnp.dot(x_ref[...], w1x_ref[...], preferred_element_type=jnp.float32)
             + jnp.dot(z2, w1z_ref[...], preferred_element_type=jnp.float32))
        # BatchNorm1d (full-batch stats, biased var, centered two-pass) + ReLU
        mu = jnp.mean(h, axis=0, keepdims=True)
        var = jnp.mean((h - mu) * (h - mu), axis=0, keepdims=True)
        scale = g1_ref[...] * jax.lax.rsqrt(var + eps)
        shift = b1_ref[...] - mu * scale
        h = jnp.maximum(h * scale + shift, 0.0)
        # Linear(2H -> H, no bias) + BatchNorm1d + ReLU
        o = jnp.dot(h, w2_ref[...], preferred_element_type=jnp.float32)
        mu2 = jnp.mean(o, axis=0, keepdims=True)
        var2 = jnp.mean((o - mu2) * (o - mu2), axis=0, keepdims=True)
        scale2 = g2_ref[...] * jax.lax.rsqrt(var2 + eps)
        shift2 = b2_ref[...] - mu2 * scale2
        o_ref[...] = jnp.maximum(o * scale2 + shift2, 0.0)


def edge_edge_forward(x, m0_i8, m1_i8, w1x, w1z, g1, b1, w2, g2, b2, *, tm=None):
    N, H = x.shape
    inner = w1x.shape[1]

    try:
        vmem_cap = int(pltpu.get_tpu_info().vmem_capacity_bytes)
    except Exception:
        vmem_cap = 64 * 2 ** 20        # conservative (v7x-sized) fallback

    if tm is None:
        # bigger row tiles on 128 MiB parts (v5e/v6e), smaller on 64 MiB v7x
        target = 512 if vmem_cap >= 96 * 2 ** 20 else 256
        tm = N if N <= target else target
        # keep the double-buffered int8 map panels within ~1/3 of VMEM
        while tm > 32 and 2 * 2 * tm * N > vmem_cap // 3 and N % (tm // 2) == 0:
            tm //= 2
    assert N % tm == 0, "row tile must divide N (pad the edge list if needed)"
    T = N // tm

    def full(shape):
        return pl.BlockSpec(shape, lambda i: (0,) * len(shape))

    m_spec = pl.BlockSpec((tm, N), lambda i: (i, 0))

    flops = (2 * 2 * N * N * H              # first gather hop
             + 2 * 2 * N * N * 2 * H        # second gather hop (transposed accumulate)
             + 2 * N * H * inner            # W1 (edge_rep block)
             + 2 * N * 4 * H * inner        # W1 (edge2edge blocks)
             + 2 * N * inner * H)           # W2
    bytes_accessed = (2 * N * N                                        # int8 maps, single stream
                      + 2 * N * H * 4                                  # x + output
                      + (H * inner + 4 * H * inner + inner * H) * 4    # weights
                      + 2 * (inner + H) * 4)                           # BN params
    transcendentals = inner + H                                        # rsqrt per column

    est_vmem = (2 * 2 * tm * N                        # double-buffered int8 map panels
                + 2 * N * H * 4 + N * H * 2           # x (+buffer) + bf16 copy
                + 2 * N * 2 * H * 4                   # ACC0 + ACC1
                + 2 * (H * inner + 4 * H * inner + inner * H
                       + 2 * inner + 2 * H) * 4       # weights / BN params (buffered)
                + N * (4 * H + inner + H) * 4         # epilogue temporaries
                + 2 * N * H * 4)                      # output
    vmem_limit = int(min(3 * vmem_cap // 4, max(16 * 2 ** 20, 2 * est_vmem)))

    return pl.pallas_call(
        edge_edge_kernel,
        out_shape=jax.ShapeDtypeStruct((N, H), jnp.float32),
        grid_spec=pltpu.PrefetchScalarGridSpec(
            num_scalar_prefetch=0,
            grid=(T,),
            in_specs=[
                full((N, H)),           # x (resident, f32)
                m_spec,                 # M0 row panel (int8)
                m_spec,                 # M1 row panel (int8)
                full((H, inner)),       # W1 block for edge_rep
                full((4 * H, inner)),   # W1 blocks for edge2edge (lane-dense K=4H)
                full((1, inner)),       # gamma1
                full((1, inner)),       # beta1
                full((inner, H)),       # W2
                full((1, H)),           # gamma2
                full((1, H)),           # beta2
            ],
            out_specs=full((N, H)),
            scratch_shapes=[
                pltpu.VMEM((N, H), jnp.bfloat16),       # x cast to bf16 once
                pltpu.VMEM((N, 2 * H), jnp.float32),    # ACC0 = M0 @ Z1
                pltpu.VMEM((N, 2 * H), jnp.float32),    # ACC1 = M1 @ Z1
            ]),
        compiler_params=pltpu.CompilerParams(
            # NOTE: the single grid axis carries the ACC0/ACC1 reduction plus the
            # trailing epilogue, so it must stay "arbitrary" (sequential grid).
            dimension_semantics=("arbitrary",),
            vmem_limit_bytes=vmem_limit),
        cost_estimate=pl.CostEstimate(flops=flops,
                                      transcendentals=transcendentals,
                                      bytes_accessed=bytes_accessed),
    )(x, m0_i8, m1_i8, w1x, w1z, g1, b1, w2, g2, b2)


def build_gather_maps(edges):
    """Dense (N,N) matrices for the two ptensors1->ptensors1 gather linmaps.

    Row r = 2*e + k corresponds to (edge e, its k-th endpoint node).
      M0[(y,v),(x,u)] = 1  iff u == v                          (restriction at intersection)
      M1[(y,v),(x,u)] = 1  iff u,v in nodes(x) & nodes(y)      (broadcast of intersection sum)
    Messages from an edge to itself are included (self-overlap).
    Both maps are symmetric by construction (the kernel relies on this for
    single-pass streaming of hop 2).
    """
    E = len(edges)
    N = 2 * E
    row_node = np.array(edges, dtype=np.int32).reshape(-1)
    M0 = (row_node[:, None] == row_node[None, :]).astype(np.float32)
    M1 = np.zeros((N, N), np.float32)
    node_sets = [set(e) for e in edges]
    for y in range(E):
        for xs in range(E):
            inter = node_sets[y] & node_sets[xs]
            if not inter:
                continue
            for kd in range(2):
                if edges[y][kd] not in inter:
                    continue
                for ks in range(2):
                    if edges[xs][ks] not in inter:
                        continue
                    M1[2 * y + kd, 2 * xs + ks] = 1.0
    return jnp.asarray(M0), jnp.asarray(M1)


def reference(x, m0, m1, w1, g1, b1, w2, g2, b2):
    z10, z11 = m0 @ x, m1 @ x
    feat = jnp.concatenate([x, m0 @ z10, m0 @ z11, m1 @ z10, m1 @ z11], -1)
    H = x.shape[1]
    h = feat @ w1.reshape(5 * H, -1)
    mu, var = jnp.mean(h, 0, keepdims=True), jnp.var(h, 0, keepdims=True)
    h = jnp.maximum((h - mu) * jax.lax.rsqrt(var + 1e-5) * g1 + b1, 0.0)
    o = h @ w2
    mu2, var2 = jnp.mean(o, 0, keepdims=True), jnp.var(o, 0, keepdims=True)
    return jnp.maximum((o - mu2) * jax.lax.rsqrt(var2 + 1e-5) * g2 + b2, 0.0)


if __name__ == "__main__":
    hidden = 32                                   # hidden_dim
    inner = 2 * hidden                            # _inner_mlp_mult = 2
    num_nodes = 8
    edges = [(i, (i + 1) % num_nodes) for i in range(num_nodes)]   # cycle graph G
    E = len(edges)
    N = 2 * E                                     # ptensors1 rows (2 atoms / edge)

    # TODO(synk): the ptens overlap/intersection discovery from G is done host-side
    # (dense M0/M1 construction); a sparse scalar-prefetch gather is the next step
    # for large graphs — only the numerical hot path runs in the kernel.
    M0, M1 = build_gather_maps(edges)
    M0n, M1n = np.asarray(M0), np.asarray(M1)
    # single-pass hop-2 accumulation requires the (structural) symmetry of both maps
    assert np.array_equal(M0n, M0n.T) and np.array_equal(M1n, M1n.T)
    M0i = jnp.asarray(M0n, jnp.int8)              # 0/1 exact in int8 (and in bf16)
    M1i = jnp.asarray(M1n, jnp.int8)

    key = jax.random.PRNGKey(0)
    k_x, k_w1, k_w2 = jax.random.split(key, 3)
    # edge_rep.torch(): (N, hidden)
    x = jax.random.normal(k_x, (N, hidden), dtype=jnp.float32)
    # Linear(5H, 2H, bias=False): stored pre-transposed, split into the 5 H-row
    # blocks matching the [edge_rep | edge2edge] column blocks -> (5, H, 2H)
    w1 = (jax.random.uniform(k_w1, (5, hidden, inner), jnp.float32, -1.0, 1.0)
          / np.sqrt(5 * hidden))
    w1x = w1[0]                                    # (H, 2H)       edge_rep block
    w1z = w1[1:].reshape(4 * hidden, inner)        # (4H, 2H)      edge2edge blocks
    # Linear(2H, H, bias=False)
    w2 = (jax.random.uniform(k_w2, (inner, hidden), jnp.float32, -1.0, 1.0)
          / np.sqrt(inner))
    # BatchNorm1d default affine init: gamma=1, beta=0
    g1 = jnp.ones((1, inner), jnp.float32)
    b1 = jnp.zeros((1, inner), jnp.float32)
    g2 = jnp.ones((1, hidden), jnp.float32)
    b2 = jnp.zeros((1, hidden), jnp.float32)

    out = edge_edge_forward(x, M0i, M1i, w1x, w1z, g1, b1, w2, g2, b2)
    out = jax.block_until_ready(out)

    ref = reference(x, M0, M1, w1, g1, b1, w2, g2, b2)
    # bf16 gather operands (f32 accumulation) -> slightly looser tolerance than pure f32
    np.testing.assert_allclose(np.asarray(out), np.asarray(ref), rtol=2e-2, atol=2e-2)

    print("KERNEL_OK")
</pallas_src>

<mosaic_0001>
module attributes {stable_mosaic.version = 11 : i64} {
  func.func @edge_edge_kernel(%arg0: i32, %arg1: memref<16x32xf32, #tpu.memory_space<vmem>>, %arg2: memref<16x16xi8, #tpu.memory_space<vmem>>, %arg3: memref<16x16xi8, #tpu.memory_space<vmem>>, %arg4: memref<32x64xf32, #tpu.memory_space<vmem>>, %arg5: memref<128x64xf32, #tpu.memory_space<vmem>>, %arg6: memref<1x64xf32, #tpu.memory_space<vmem>>, %arg7: memref<1x64xf32, #tpu.memory_space<vmem>>, %arg8: memref<64x32xf32, #tpu.memory_space<vmem>>, %arg9: memref<1x32xf32, #tpu.memory_space<vmem>>, %arg10: memref<1x32xf32, #tpu.memory_space<vmem>>, %arg11: memref<16x32xf32, #tpu.memory_space<vmem>>, %arg12: memref<16x32xbf16, #tpu.memory_space<vmem>>, %arg13: memref<16x64xf32, #tpu.memory_space<vmem>>, %arg14: memref<16x64xf32, #tpu.memory_space<vmem>>) attributes {dimension_semantics = [#tpu.dimension_semantics<arbitrary>], iteration_bounds = array<i64: 1>, scalar_prefetch = 0 : i64, scratch_operands = 3 : i64, tpu.core_type = #tpu.core_type<tc>, window_params = [{pipeline_mode = #tpu.pipeline_mode<synchronous>, transform_indices = @transform_0, window_bounds = array<i64: 16, 32>}, {transform_indices = @transform_1, window_bounds = array<i64: 16, 16>}, {transform_indices = @transform_2, window_bounds = array<i64: 16, 16>}, {pipeline_mode = #tpu.pipeline_mode<synchronous>, transform_indices = @transform_3, window_bounds = array<i64: 32, 64>}, {pipeline_mode = #tpu.pipeline_mode<synchronous>, transform_indices = @transform_4, window_bounds = array<i64: 128, 64>}, {pipeline_mode = #tpu.pipeline_mode<synchronous>, transform_indices = @transform_5, window_bounds = array<i64: 1, 64>}, {pipeline_mode = #tpu.pipeline_mode<synchronous>, transform_indices = @transform_6, window_bounds = array<i64: 1, 64>}, {pipeline_mode = #tpu.pipeline_mode<synchronous>, transform_indices = @transform_7, window_bounds = array<i64: 64, 32>}, {pipeline_mode = #tpu.pipeline_mode<synchronous>, transform_indices = @transform_8, window_bounds = array<i64: 1, 32>}, {pipeline_mode = #tpu.pipeline_mode<synchronous>, transform_indices = @transform_9, window_bounds = array<i64: 1, 32>}, {pipeline_mode = #tpu.pipeline_mode<synchronous>, transform_indices = @transform_10, window_bounds = array<i64: 16, 32>}]} {
    %c0_i32 = arith.constant 0 : i32
    %0 = arith.cmpi eq, %arg0, %c0_i32 : i32
    %1 = arith.extui %0 : i1 to i32
    %c0_i32_0 = arith.constant 0 : i32
    %2 = arith.cmpi ne, %1, %c0_i32_0 : i32
    scf.if %2 {
      %c0_19 = arith.constant 0 : index
      %c0_20 = arith.constant 0 : index
      %25 = vector.load %arg1[%c0_19, %c0_20] : memref<16x32xf32, #tpu.memory_space<vmem>>, vector<16x32xf32>
      %26 = arith.truncf %25 : vector<16x32xf32> to vector<16x32xbf16>
      %c0_21 = arith.constant 0 : index
      %c0_22 = arith.constant 0 : index
      %27 = vector.load %arg12[%c0_21, %c0_22] : memref<16x32xbf16, #tpu.memory_space<vmem>>, vector<16x32xbf16>
      tpu.vector_store %arg12[%c0_21, %c0_22], %26 {strides = array<i32>} : memref<16x32xbf16, #tpu.memory_space<vmem>>, vector<16x32xbf16>,
      %cst_23 = arith.constant 0.000000e+00 : f32
      %28 = vector.broadcast %cst_23 : f32 to vector<16x64xf32>
      %c0_24 = arith.constant 0 : index
      %c0_25 = arith.constant 0 : index
      %29 = vector.load %arg13[%c0_24, %c0_25] : memref<16x64xf32, #tpu.memory_space<vmem>>, vector<16x64xf32>
      tpu.vector_store %arg13[%c0_24, %c0_25], %28 {strides = array<i32>} : memref<16x64xf32, #tpu.memory_space<vmem>>, vector<16x64xf32>,
      %cst_26 = arith.constant 0.000000e+00 : f32
      %30 = vector.broadcast %cst_26 : f32 to vector<16x64xf32>
      %c0_27 = arith.constant 0 : index
      %c0_28 = arith.constant 0 : index
      %31 = vector.load %arg14[%c0_27, %c0_28] : memref<16x64xf32, #tpu.memory_space<vmem>>, vector<16x64xf32>
      tpu.vector_store %arg14[%c0_27, %c0_28], %30 {strides = array<i32>} : memref<16x64xf32, #tpu.memory_space<vmem>>, vector<16x64xf32>,
    } else {
    }
    %c0 = arith.constant 0 : index
    %c0_1 = arith.constant 0 : index
    %3 = vector.load %arg2[%c0, %c0_1] : memref<16x16xi8, #tpu.memory_space<vmem>>, vector<16x16xi8>
    %4 = arith.sitofp %3 : vector<16x16xi8> to vector<16x16xf32>
    %5 = arith.truncf %4 : vector<16x16xf32> to vector<16x16xbf16>
    %c0_2 = arith.constant 0 : index
    %c0_3 = arith.constant 0 : index
    %6 = vector.load %arg3[%c0_2, %c0_3] : memref<16x16xi8, #tpu.memory_space<vmem>>, vector<16x16xi8>
    %7 = arith.sitofp %6 : vector<16x16xi8> to vector<16x16xf32>
    %8 = arith.truncf %7 : vector<16x16xf32> to vector<16x16xbf16>
    %c0_4 = arith.constant 0 : index
    %c0_5 = arith.constant 0 : index
    %9 = vector.load %arg12[%c0_4, %c0_5] : memref<16x32xbf16, #tpu.memory_space<vmem>>, vector<16x32xbf16>
    %cst = arith.constant dense<0.000000e+00> : vector<16x32xf32>
    %10 = tpu.matmul %5, %9, %cst {dimension_numbers = #tpu.dot_dimension_numbers<[1], [0], [0], [1], [0, 0, 1, 1], [], []>} : vector<16x16xbf16>, vector<16x32xbf16>, vector<16x32xf32> -> vector<16x32xf32>
    %cst_6 = arith.constant dense<0.000000e+00> : vector<16x32xf32>
    %11 = tpu.matmul %8, %9, %cst_6 {dimension_numbers = #tpu.dot_dimension_numbers<[1], [0], [0], [1], [0, 0, 1, 1], [], []>} : vector<16x16xbf16>, vector<16x32xbf16>, vector<16x32xf32> -> vector<16x32xf32>
    %12 = tpu.concatenate %10, %11 in 1 : vector<16x32xf32>, vector<16x32xf32> -> vector<16x64xf32>
    %13 = arith.truncf %12 : vector<16x64xf32> to vector<16x64xbf16>
    %c0_7 = arith.constant 0 : index
    %c0_8 = arith.constant 0 : index
    %14 = vector.load %arg13[%c0_7, %c0_8] : memref<16x64xf32, #tpu.memory_space<vmem>>, vector<16x64xf32>
    %cst_9 = arith.constant dense<0.000000e+00> : vector<16x64xf32>
    %15 = tpu.matmul %5, %13, %cst_9 {dimension_numbers = #tpu.dot_dimension_numbers<[0], [0], [1], [1], [0, 1, 1, 1], [], []>} : vector<16x16xbf16>, vector<16x64xbf16>, vector<16x64xf32> -> vector<16x64xf32>
    %16 = arith.addf %14, %15 : vector<16x64xf32>
    %c0_10 = arith.constant 0 : index
    %c0_11 = arith.constant 0 : index
    %17 = vector.load %arg13[%c0_10, %c0_11] : memref<16x64xf32, #tpu.memory_space<vmem>>, vector<16x64xf32>
    tpu.vector_store %arg13[%c0_10, %c0_11], %16 {strides = array<i32>} : memref<16x64xf32, #tpu.memory_space<vmem>>, vector<16x64xf32>,
    %c0_12 = arith.constant 0 : index
    %c0_13 = arith.constant 0 : index
    %18 = vector.load %arg14[%c0_12, %c0_13] : memref<16x64xf32, #tpu.memory_space<vmem>>, vector<16x64xf32>
    %cst_14 = arith.constant dense<0.000000e+00> : vector<16x64xf32>
    %19 = tpu.matmul %8, %13, %cst_14 {dimension_numbers = #tpu.dot_dimension_numbers<[0], [0], [1], [1], [0, 1, 1, 1], [], []>} : vector<16x16xbf16>, vector<16x64xbf16>, vector<16x64xf32> -> vector<16x64xf32>
    %20 = arith.addf %18, %19 : vector<16x64xf32>
    %c0_15 = arith.constant 0 : index
    %c0_16 = arith.constant 0 : index
    %21 = vector.load %arg14[%c0_15, %c0_16] : memref<16x64xf32, #tpu.memory_space<vmem>>, vector<16x64xf32>
    tpu.vector_store %arg14[%c0_15, %c0_16], %20 {strides = array<i32>} : memref<16x64xf32, #tpu.memory_space<vmem>>, vector<16x64xf32>,
    %c0_i32_17 = arith.constant 0 : i32
    %22 = arith.cmpi eq, %arg0, %c0_i32_17 : i32
    %23 = arith.extui %22 : i1 to i32
    %c0_i32_18 = arith.constant 0 : i32
    %24 = arith.cmpi ne, %23, %c0_i32_18 : i32
    scf.if %24 {
      %c0_19 = arith.constant 0 : index
      %c0_20 = arith.constant 0 : index
      %25 = vector.load %arg13[%c0_19, %c0_20] : memref<16x64xf32, #tpu.memory_space<vmem>>, vector<16x64xf32>
      %c0_21 = arith.constant 0 : index
      %c0_22 = arith.constant 0 : index
      %26 = vector.load %arg14[%c0_21, %c0_22] : memref<16x64xf32, #tpu.memory_space<vmem>>, vector<16x64xf32>
      %27 = tpu.concatenate %25, %26 in 1 : vector<16x64xf32>, vector<16x64xf32> -> vector<16x128xf32>
      %c0_23 = arith.constant 0 : index
      %c0_24 = arith.constant 0 : index
      %28 = vector.load %arg1[%c0_23, %c0_24] : memref<16x32xf32, #tpu.memory_space<vmem>>, vector<16x32xf32>
      %c0_25 = arith.constant 0 : index
      %c0_26 = arith.constant 0 : index
      %29 = vector.load %arg4[%c0_25, %c0_26] : memref<32x64xf32, #tpu.memory_space<vmem>>, vector<32x64xf32>
      %cst_27 = arith.constant dense<0.000000e+00> : vector<16x64xf32>
      %30 = tpu.matmul %28, %29, %cst_27 {dimension_numbers = #tpu.dot_dimension_numbers<[1], [0], [0], [1], [0, 0, 1, 1], [], []>} : vector<16x32xf32>, vector<32x64xf32>, vector<16x64xf32> -> vector<16x64xf32>
      %c0_28 = arith.constant 0 : index
      %c0_29 = arith.constant 0 : index
      %31 = vector.load %arg5[%c0_28, %c0_29] : memref<128x64xf32, #tpu.memory_space<vmem>>, vector<128x64xf32>
      %cst_30 = arith.constant dense<0.000000e+00> : vector<16x64xf32>
      %32 = tpu.matmul %27, %31, %cst_30 {dimension_numbers = #tpu.dot_dimension_numbers<[1], [0], [0], [1], [0, 0, 1, 1], [], []>} : vector<16x128xf32>, vector<128x64xf32>, vector<16x64xf32> -> vector<16x64xf32>
      %33 = arith.addf %30, %32 : vector<16x64xf32>
      %cst_31 = arith.constant dense<0.000000e+00> : vector<64xf32>
      %34 = vector.multi_reduction <add>, %33, %cst_31 [0] : vector<16x64xf32> to vector<64xf32>
      %35 = vector.shape_cast %34 : vector<64xf32> to vector<1x64xf32>
      %cst_32 = arith.constant 1.600000e+01 : f32
      %36 = vector.broadcast %cst_32 : f32 to vector<1x64xf32>
      %37 = arith.divf %35, %36 : vector<1x64xf32>
      %38 = vector.broadcast %37 : vector<1x64xf32> to vector<16x64xf32>
      %39 = arith.subf %33, %38 : vector<16x64xf32>
      %40 = vector.broadcast %37 : vector<1x64xf32> to vector<16x64xf32>
      %41 = arith.subf %33, %40 : vector<16x64xf32>
      %42 = arith.mulf %39, %41 : vector<16x64xf32>
      %cst_33 = arith.constant dense<0.000000e+00> : vector<64xf32>
      %43 = vector.multi_reduction <add>, %42, %cst_33 [0] : vector<16x64xf32> to vector<64xf32>
      %44 = vector.shape_cast %43 : vector<64xf32> to vector<1x64xf32>
      %cst_34 = arith.constant 1.600000e+01 : f32
      %45 = vector.broadcast %cst_34 : f32 to vector<1x64xf32>
      %46 = arith.divf %44, %45 : vector<1x64xf32>
      %c0_35 = arith.constant 0 : index
      %c0_36 = arith.constant 0 : index
      %47 = vector.load %arg6[%c0_35, %c0_36] : memref<1x64xf32, #tpu.memory_space<vmem>>, vector<1x64xf32>
      %cst_37 = arith.constant 9.99999974E-6 : f32
      %48 = vector.broadcast %cst_37 : f32 to vector<1x64xf32>
      %49 = arith.addf %46, %48 : vector<1x64xf32>
      %50 = math.rsqrt %49 : vector<1x64xf32>
      %51 = arith.mulf %47, %50 : vector<1x64xf32>
      %c0_38 = arith.constant 0 : index
      %c0_39 = arith.constant 0 : index
      %52 = vector.load %arg7[%c0_38, %c0_39] : memref<1x64xf32, #tpu.memory_space<vmem>>, vector<1x64xf32>
      %53 = arith.mulf %37, %51 : vector<1x64xf32>
      %54 = arith.subf %52, %53 : vector<1x64xf32>
      %55 = vector.broadcast %51 : vector<1x64xf32> to vector<16x64xf32>
      %56 = arith.mulf %33, %55 : vector<16x64xf32>
      %57 = vector.broadcast %54 : vector<1x64xf32> to vector<16x64xf32>
      %58 = arith.addf %56, %57 : vector<16x64xf32>
      %cst_40 = arith.constant 0.000000e+00 : f32
      %59 = vector.broadcast %cst_40 : f32 to vector<16x64xf32>
      %60 = arith.maximumf %58, %59 : vector<16x64xf32>
      %c0_41 = arith.constant 0 : index
      %c0_42 = arith.constant 0 : index
      %61 = vector.load %arg8[%c0_41, %c0_42] : memref<64x32xf32, #tpu.memory_space<vmem>>, vector<64x32xf32>
      %cst_43 = arith.constant dense<0.000000e+00> : vector<16x32xf32>
      %62 = tpu.matmul %60, %61, %cst_43 {dimension_numbers = #tpu.dot_dimension_numbers<[1], [0], [0], [1], [0, 0, 1, 1], [], []>} : vector<16x64xf32>, vector<64x32xf32>, vector<16x32xf32> -> vector<16x32xf32>
      %cst_44 = arith.constant dense<0.000000e+00> : vector<32xf32>
      %63 = vector.multi_reduction <add>, %62, %cst_44 [0] : vector<16x32xf32> to vector<32xf32>
      %64 = vector.shape_cast %63 : vector<32xf32> to vector<1x32xf32>
      %cst_45 = arith.constant 1.600000e+01 : f32
      %65 = vector.broadcast %cst_45 : f32 to vector<1x32xf32>
      %66 = arith.divf %64, %65 : vector<1x32xf32>
      %67 = vector.broadcast %66 : vector<1x32xf32> to vector<16x32xf32>
      %68 = arith.subf %62, %67 : vector<16x32xf32>
      %69 = vector.broadcast %66 : vector<1x32xf32> to vector<16x32xf32>
      %70 = arith.subf %62, %69 : vector<16x32xf32>
      %71 = arith.mulf %68, %70 : vector<16x32xf32>
      %cst_46 = arith.constant dense<0.000000e+00> : vector<32xf32>
      %72 = vector.multi_reduction <add>, %71, %cst_46 [0] : vector<16x32xf32> to vector<32xf32>
      %73 = vector.shape_cast %72 : vector<32xf32> to vector<1x32xf32>
      %cst_47 = arith.constant 1.600000e+01 : f32
      %74 = vector.broadcast %cst_47 : f32 to vector<1x32xf32>
      %75 = arith.divf %73, %74 : vector<1x32xf32>
      %c0_48 = arith.constant 0 : index
      %c0_49 = arith.constant 0 : index
      %76 = vector.load %arg9[%c0_48, %c0_49] : memref<1x32xf32, #tpu.memory_space<vmem>>, vector<1x32xf32>
      %cst_50 = arith.constant 9.99999974E-6 : f32
      %77 = vector.broadcast %cst_50 : f32 to vector<1x32xf32>
      %78 = arith.addf %75, %77 : vector<1x32xf32>
      %79 = math.rsqrt %78 : vector<1x32xf32>
      %80 = arith.mulf %76, %79 : vector<1x32xf32>
      %c0_51 = arith.constant 0 : index
      %c0_52 = arith.constant 0 : index
      %81 = vector.load %arg10[%c0_51, %c0_52] : memref<1x32xf32, #tpu.memory_space<vmem>>, vector<1x32xf32>
      %82 = arith.mulf %66, %80 : vector<1x32xf32>
      %83 = arith.subf %81, %82 : vector<1x32xf32>
      %84 = vector.broadcast %80 : vector<1x32xf32> to vector<16x32xf32>
      %85 = arith.mulf %62, %84 : vector<16x32xf32>
      %86 = vector.broadcast %83 : vector<1x32xf32> to vector<16x32xf32>
      %87 = arith.addf %85, %86 : vector<16x32xf32>
      %cst_53 = arith.constant 0.000000e+00 : f32
      %88 = vector.broadcast %cst_53 : f32 to vector<16x32xf32>
      %89 = arith.maximumf %87, %88 : vector<16x32xf32>
      %c0_54 = arith.constant 0 : index
      %c0_55 = arith.constant 0 : index
      %90 = vector.load %arg11[%c0_54, %c0_55] : memref<16x32xf32, #tpu.memory_space<vmem>>, vector<16x32xf32>
      tpu.vector_store %arg11[%c0_54, %c0_55], %89 {strides = array<i32>} : memref<16x32xf32, #tpu.memory_space<vmem>>, vector<16x32xf32>,
    } else {
    }
    return
  }
  func.func @transform_0(%arg0: i32) -> (i32, i32) {
    %c0_i32 = arith.constant 0 : i32
    %c0_i32_0 = arith.constant 0 : i32
    %c0_i32_1 = arith.constant 0 : i32
    return %c0_i32, %c0_i32_0 : i32, i32
  }
  func.func @transform_1(%arg0: i32) -> (i32, i32) {
    %c0_i32 = arith.constant 0 : i32
    %c0_i32_0 = arith.constant 0 : i32
    return %arg0, %c0_i32 : i32, i32
  }
  func.func @transform_2(%arg0: i32) -> (i32, i32) {
    %c0_i32 = arith.constant 0 : i32
    %c0_i32_0 = arith.constant 0 : i32
    return %arg0, %c0_i32 : i32, i32
  }
  func.func @transform_3(%arg0: i32) -> (i32, i32) {
    %c0_i32 = arith.constant 0 : i32
    %c0_i32_0 = arith.constant 0 : i32
    %c0_i32_1 = arith.constant 0 : i32
    return %c0_i32, %c0_i32_0 : i32, i32
  }
  func.func @transform_4(%arg0: i32) -> (i32, i32) {
    %c0_i32 = arith.constant 0 : i32
    %c0_i32_0 = arith.constant 0 : i32
    %c0_i32_1 = arith.constant 0 : i32
    return %c0_i32, %c0_i32_0 : i32, i32
  }
  func.func @transform_5(%arg0: i32) -> (i32, i32) {
    %c0_i32 = arith.constant 0 : i32
    %c0_i32_0 = arith.constant 0 : i32
    %c0_i32_1 = arith.constant 0 : i32
    return %c0_i32, %c0_i32_0 : i32, i32
  }
  func.func @transform_6(%arg0: i32) -> (i32, i32) {
    %c0_i32 = arith.constant 0 : i32
    %c0_i32_0 = arith.constant 0 : i32
    %c0_i32_1 = arith.constant 0 : i32
    return %c0_i32, %c0_i32_0 : i32, i32
  }
  func.func @transform_7(%arg0: i32) -> (i32, i32) {
    %c0_i32 = arith.constant 0 : i32
    %c0_i32_0 = arith.constant 0 : i32
    %c0_i32_1 = arith.constant 0 : i32
    return %c0_i32, %c0_i32_0 : i32, i32
  }
  func.func @transform_8(%arg0: i32) -> (i32, i32) {
    %c0_i32 = arith.constant 0 : i32
    %c0_i32_0 = arith.constant 0 : i32
    %c0_i32_1 = arith.constant 0 : i32
    return %c0_i32, %c0_i32_0 : i32, i32
  }
  func.func @transform_9(%arg0: i32) -> (i32, i32) {
    %c0_i32 = arith.constant 0 : i32
    %c0_i32_0 = arith.constant 0 : i32
    %c0_i32_1 = arith.constant 0 : i32
    return %c0_i32, %c0_i32_0 : i32, i32
  }
  func.func @transform_10(%arg0: i32) -> (i32, i32) {
    %c0_i32 = arith.constant 0 : i32
    %c0_i32_0 = arith.constant 0 : i32
    %c0_i32_1 = arith.constant 0 : i32
    return %c0_i32, %c0_i32_0 : i32, i32
  }
}

</mosaic_0001>

<bundles_post_ra>
// kernel: tpu_custom_call.1
= control target key start
LH: loop header
LB: loop body
LE: loop exit
PB: predicated region body
PF: predicated region fallthrough
CT: control target
= control target key end

     0   :  { %vm44_vm0 = vcmask 261120   ;;  %v952_v2 = vmov 0.0   ;;  %vm953_vm1 = vmmov 0   ;;  %s1183_s0 = inlined_call_operand.vmem [shape: f32[16,32], index: 0, kind: input, shape index: {}]   ;;  %s1184_s1 = inlined_call_operand.vmem [shape: s8[16,16], index: 1, kind: input, shape index: {}]   ;;  %s1185_s2 = inlined_call_operand.vmem [shape: s8[16,16], index: 2, kind: input, shape index: {}]   ;;  %s1186_s3 = inlined_call_operand.vmem [shape: f32[32,64], index: 3, kind: input, shape index: {}]   ;;  %s1187_s4 = inlined_call_operand.vmem [shape: f32[128,64], index: 4, kind: input, shape index: {}]   ;;  %s1188_s5 = inlined_call_operand.vmem [shape: f32[1,64], index: 5, kind: input, shape index: {}]   ;;  %s1189_s6 = inlined_call_operand.vmem [shape: f32[1,64], index: 6, kind: input, shape index: {}]   ;;  %s1190_s7 = inlined_call_operand.vmem [shape: f32[64,32], index: 7, kind: input, shape index: {}]   ;;  %s1191_s8 = inlined_call_operand.vmem [shape: f32[1,32], index: 8, kind: input, shape index: {}]   ;;  %s1192_s9 = inlined_call_operand.vmem [shape: f32[1,32], index: 9, kind: input, shape index: {}]   ;;  %s1193_s10 = inlined_call_operand.hbm [shape: f32[16,32], index: 10, kind: output, shape index: {}]  }
   0x1   :  { %v1017_v0 = vld [vmem:[%s1183_s0] sm:$0xff]  ;;  %v1022_v1 = vld [vmem:[%s1183_s0 + $0x8] sm:$0xff]  ;;  %759 = vmatprep.subr.bf16.mxu1 %v952_v2  ;;  %761 = vmatprep.mubr.msk.bf16.mxu1 %vm953_vm1, %v952_v2 }
   0x2   :  { %v43_v3 = vpack.c.bf16 %v1022_v1, %v1017_v0  ;;  %v51_v4 = vld [vmem:[%s1184_s1] sm:$0x3]  ;;  %v52_v5 = vld [vmem:[%s1184_s1 + $0x2] sm:$0x3]  ;;  %771 = vmatprep.subr.bf16.mxu0 %v952_v2  ;;  %773 = vmatprep.mubr.msk.bf16.mxu0 %vm953_vm1, %v952_v2 }
   0x3   :  { %v53_v6 = vunpack.c.l.s8.bf16 %v51_v4  ;;  %v54_v7 = vunpack.c.l.s8.bf16 %v52_v5 }
   0x4   :  { %15 = vsyncpa [#allocation6], 0  ;;  %45 = vst.msk [vmem:[#allocation2] sm:$0xff] %vm44_vm0, %v43_v3  ;;  %vm65_vm2 = vcmask 130048   ;;  %v55_v10 = vld [vmem:[%s1185_s2] sm:$0x3] }
   0x5   :  { %v707_v8 = vcombine.low %v53_v6, %v54_v7  ;;  %v56_v11 = vld [vmem:[%s1185_s2 + $0x2] sm:$0x3]  ;;  %v57_v12 = vunpack.c.l.s8.bf16 %v55_v10  ;;  %s954_s1 = smov 32   ;;  %vm46_vm3 = vcmask 523264   ;;  %v330_v33 = vld [vmem:[%s1187_s4 + $0x8] sm:$0xff]  ;;  %v331_v34 = vld [vmem:[%s1187_s4 + $0x10] sm:$0xff] }
   0x6   :  { %v58_v13 = vunpack.c.l.s8.bf16 %v56_v11  ;;  %49 = vst.msk [vmem:[#allocation4] sm:$0xff] %vm46_vm3, %v952_v2  ;;  %47 = vst.msk [vmem:[#allocation3] sm:$0xff] %vm46_vm3, %v952_v2  ;;  %v329_v32 = vld [vmem:[%s1187_s4] sm:$0xff]  ;;  %v332_v36 = vld [vmem:[%s1187_s4 + $0x18] sm:$0xff]  ;;  %s956_s16 = smov [#allocation5]  }
   0x7   :  { %174 = vxpose.xlu1.c.b16.start.end [1/1] (short) (narrow) %v707_v8, 16  ;;  %48 = vst.msk [vmem:[#allocation3 + $0x8] sm:$0xff] %vm46_vm3, %v952_v2  ;;  %50 = vst.msk [vmem:[#allocation4 + $0x8] sm:$0xff] %vm46_vm3, %v952_v2  ;;  %v848_v35 = vpack.c.bf16 %v330_v33, %v329_v32  ;;  %v852_v37 = vpack.c.bf16 %v332_v36, %v331_v34  ;;  %v333_v38 = vld [vmem:[%s1187_s4 + $0x20] sm:$0xff]  ;;  %v334_v39 = vld [vmem:[%s1187_s4 + $0x28] sm:$0xff]  ;;  %s696_s17 = sshll.u32 %s956_s16, 4  ;;  %s697_s17 = int_to_ptr.vmem [resolvable:$true] %s696_s17 }
   0x8   :  { %v709_v14 = vcombine.low %v57_v12, %v58_v13  ;;  %v856_v40 = vpack.c.bf16 %v334_v39, %v333_v38  ;;  %v335_v41 = vld [vmem:[%s1187_s4 + $0x30] sm:$0xff]  ;;  %v336_v42 = vld [vmem:[%s1187_s4 + $0x38] sm:$0xff]  ;;  %v337_v44 = vld [vmem:[%s1187_s4 + $0x40] sm:$0xff]  ;;  %p933_p1 = scmp.lt.s32.totalorder %s697_s17, %s697_s17 }
   0x9   :  { %v860_v43 = vpack.c.bf16 %v336_v42, %v335_v41  ;;  %v338_v45 = vld [vmem:[%s1187_s4 + $0x48] sm:$0xff]  ;;  %v339_v47 = vld [vmem:[%s1187_s4 + $0x50] sm:$0xff]  ;;  %v340_v48 = vld [vmem:[%s1187_s4 + $0x58] sm:$0xff] }
   0xa   :  { %v864_v46 = vpack.c.bf16 %v338_v45, %v337_v44  ;;  %v868_v49 = vpack.c.bf16 %v340_v48, %v339_v47  ;;  %v341_v50 = vld [vmem:[%s1187_s4 + $0x60] sm:$0xff]  ;;  %v342_v51 = vld [vmem:[%s1187_s4 + $0x68] sm:$0xff]  ;;  %v343_v62 = vld [vmem:[%s1187_s4 + $0x70] sm:$0xff] }
   0xb   :  { %v59_v9 = vld [vmem:[#allocation2] sm:$0xff]  ;;  %v872_v52 = vpack.c.bf16 %v342_v51, %v341_v50  ;;  %v344_v63 = vld [vmem:[%s1187_s4 + $0x78] sm:$0xff]  ;;  %v326_v11 = vld [vmem:[%s1186_s3 + $0x8] sm:$0xff]  ;;  %s955_s4 = smov 64  }
   0xc   :  { %760 = vmatpush3.bf16.msra.mxu1 %v59_v9  ;;  %v876_v4 = vpack.c.bf16 %v344_v63, %v343_v62  ;;  %v325_v10 = vld [vmem:[%s1186_s3] sm:$0xff]  ;;  %v557_v33 = vld [vmem:[%s1190_s7 + $0x30] sm:$0xff]  ;;  %v558_v34 = vld [vmem:[%s1190_s7 + $0x38] sm:$0xff]  ;;  %v534_v63 = vlaneseq }
   0xd   :  { %765 = vmatprep.subr.bf16.mxu1 %v952_v2  ;;  %v171_v53 = vld [vmem:[#allocation3] sm:$0xff]  ;;  %v239_v61 = vld [vmem:[#allocation4] sm:$0xff]  ;;  %v880_v12 = vpack.c.bf16 %v326_v11, %v325_v10 }
   0xe   :  { %v172_v55 = vld [vmem:[#allocation3 + $0x8] sm:$0xff]  ;;  %v240_v3 = vld [vmem:[#allocation4 + $0x8] sm:$0xff] }
   0xf   :  { %762 = vmatmul.mubr.msk.bf16.vlgmr.msra.gmra.mrb[0].mxu1 %vm65_vm2, %v707_v8 }
  0x10   :  { %766 = vmatpush3.bf16.msra.mxu1 %v59_v9  ;;  %767 = vmatprep.mubr.msk.bf16.mxu1 %vm953_vm1, %v952_v2 }
  0x11   :  { %777 = vmatprep.subr.bf16.mxu1 %v952_v2 }
  0x17   :  { %768 = vmatmul.mubr.msk.bf16.vlgmr.msra.gmra.mrb[4].mxu1 %vm65_vm2, %v709_v14 }
  0x18   :  { %779 = vmatprep.mubr.msk.bf16.mxu1 %vm953_vm1, %v952_v2 }
  0x6d   :  { %v182_v30 = vpop.trf.xlu1 }
  0xe2   :  { %v103_v15 = vpop.f32.mrb[0].mxu1 }
  0xe3   :  { %v763_v16 = vpop.f32.mrb[1].mxu1 }
  0xe4   :  { %v106_v17 = vpop.f32.mrb[2].mxu1 }
  0xe5   :  { %v764_v18 = vpop.f32.mrb[3].mxu1 }
  0xea   :  { %v152_v19 = vpop.f32.mrb[4].mxu1 }
  0xeb   :  { %v769_v20 = vpop.f32.mrb[5].mxu1 }
  0xec   :  { %v155_v21 = vpop.f32.mrb[6].mxu1  ;;  %v328_v20 = vld [vmem:[%s1186_s3 + $0x18] sm:$0xff] }
  0xed   :  { %v914_v22 = vpack.i.bf16 %v155_v21, %v152_v19  ;;  %v770_v23 = vpop.f32.mrb[7].mxu1  ;;  %v327_v19 = vld [vmem:[%s1186_s3 + $0x10] sm:$0xff] }
  0xef   :  { %915 = vrot.lane.b32.xlu0 %v914_v22, %s954_s1 }
 0x10d   :  { %242 = vxpose.xlu0.c.b16.start.end [1/1] (short) (narrow) %v709_v14, 16 }
 0x161   :  { %v916_v24 = vpop.permute.xlu0 %915 }
 0x162   :  { %v918_v25 = vunpack.i.h.bf16 %v916_v24  ;;  %v917_v26 = vunpack.i.l.bf16 %v916_v24 }
 0x164   :  { %v168_v27 = vsel %vm44_vm0, %v103_v15, %v917_v26  ;;  %v169_v28 = vsel %vm44_vm0, %v106_v17, %v918_v25  ;;  %v884_v25 = vpack.c.bf16 %v328_v20, %v327_v19  ;;  %v551_v26 = vld [vmem:[%s1190_s7] sm:$0xff] }
 0x165   :  { %v170_v29 = vpack.c.bf16 %v169_v28, %v168_v27  ;;  %v552_v27 = vld [vmem:[%s1190_s7 + $0x8] sm:$0xff] }
 0x166   :  { %v888_v28 = vpack.c.bf16 %v552_v27, %v551_v26 }
 0x167   :  { %772 = vmatpush3.bf16.msra.mxu0 %v170_v29  ;;  %778 = vmatpush3.bf16.msra.mxu1 %v170_v29  ;;  %v554_v29 = vld [vmem:[%s1190_s7 + $0x18] sm:$0xff] }
 0x168   :  { %849 = vmatprep.subr.bf16.mxu0 %v848_v35  ;;  %889 = vmatprep.subr.bf16.mxu1 %v888_v28 }
 0x16a   :  { %774 = vmatmul.mubr.msk.bf16.vlgmr.msra.gmra.mrb[0].mxu0 %vm65_vm2, %v182_v30  ;;  %v555_v30 = vld [vmem:[%s1190_s7 + $0x20] sm:$0xff] }
 0x16b   :  { %851 = vmatpush3.bf16.msra.mxu0 %v848_v35  ;;  %v900_v35 = vpack.c.bf16 %v558_v34, %v557_v33 }
 0x16c   :  { %853 = vmatprep.subr.bf16.mxu0 %v852_v37 }
 0x16f   :  { %855 = vmatpush3.bf16.msra.mxu0 %v852_v37 }
 0x170   :  { %857 = vmatprep.subr.bf16.mxu0 %v856_v40 }
 0x173   :  { %v250_v31 = vpop.trf.xlu0  ;;  %859 = vmatpush3.bf16.msra.mxu0 %v856_v40 }
 0x174   :  { %780 = vmatmul.mubr.msk.bf16.vlgmr.msra.gmra.mrb[8].mxu1 %vm65_vm2, %v250_v31  ;;  %861 = vmatprep.subr.bf16.mxu0 %v860_v43  ;;  %v556_v31 = vld [vmem:[%s1190_s7 + $0x28] sm:$0xff] }
 0x175   :  { %891 = vmatpush3.bf16.msra.mxu1 %v888_v28  ;;  %v896_v32 = vpack.c.bf16 %v556_v31, %v555_v30 }
 0x177   :  { %863 = vmatpush3.bf16.msra.mxu0 %v860_v43 }
 0x178   :  { %865 = vmatprep.subr.bf16.mxu0 %v864_v46 }
 0x17b   :  { %867 = vmatpush3.bf16.msra.mxu0 %v864_v46 }
 0x17c   :  { %869 = vmatprep.subr.bf16.mxu0 %v868_v49 }
 0x17f   :  { %871 = vmatpush3.bf16.msra.mxu0 %v868_v49 }
 0x180   :  { %873 = vmatprep.subr.bf16.mxu0 %v872_v52 }
 0x183   :  { %875 = vmatpush3.bf16.msra.mxu0 %v872_v52 }
 0x184   :  { %877 = vmatprep.subr.bf16.mxu0 %v876_v4 }
 0x187   :  { %879 = vmatpush3.bf16.msra.mxu0 %v876_v4 }
 0x188   :  { %881 = vmatprep.subr.bf16.mxu0 %v880_v12 }
 0x23d   :  { %v227_v54 = vpop.f32.mrb[0].mxu0 }
 0x23e   :  { %v234_v56 = vadd.f32 %v227_v54, %v171_v53  ;;  %v775_v57 = vpop.f32.mrb[1].mxu0 }
 0x23f   :  { %v230_v58 = vpop.f32.mrb[2].mxu0 }
 0x240   :  { %237 = vst.msk [vmem:[#allocation3] sm:$0xff] %vm46_vm3, %v234_v56  ;;  %v235_v59 = vadd.f32 %v230_v58, %v172_v55  ;;  %v776_v60 = vpop.f32.mrb[3].mxu0 }
 0x242   :  { %238 = vst.msk [vmem:[#allocation3 + $0x8] sm:$0xff] %vm46_vm3, %v235_v59 }
 0x247   :  { %v295_v2 = vpop.f32.mrb[8].mxu1  ;;  %v309_v16 = vld [vmem:[#allocation3] sm:$0xff] }
 0x248   :  { %v302_v5 = vadd.f32 %v295_v2, %v239_v61  ;;  %v781_v6 = vpop.f32.mrb[9].mxu1  ;;  %v535_v2 = vshrl.u32 %v534_v63, 7 }
 0x249   :  { %v298_v7 = vpop.f32.mrb[10].mxu1  ;;  %v310_v18 = vld [vmem:[#allocation3 + $0x8] sm:$0xff] }
 0x24a   :  { %304 = vst.msk [vmem:[#allocation4] sm:$0xff] %vm46_vm3, %v302_v5  ;;  %v303_v8 = vadd.f32 %v298_v7, %v240_v3  ;;  %v782_v9 = vpop.f32.mrb[11].mxu1  ;;  %v526_v3 = vld [vmem:[%s1188_s5] sm:$0x1]  ;;  %v536_v4 = vsub.s32 0, %v535_v2 }
 0x24b   :  { %v530_v7 = vld [vmem:[%s1189_s6] sm:$0x1] }
 0x24c   :  { %305 = vst.msk [vmem:[#allocation4 + $0x8] sm:$0xff] %vm46_vm3, %v303_v8 }
 0x251   :  { %v311_v13 = vld [vmem:[#allocation4] sm:$0xff] }
 0x253   :  { %v312_v14 = vld [vmem:[#allocation4 + $0x8] sm:$0xff] }
 0x254   :  { %v919_v15 = vpack.i.bf16 %v312_v14, %v311_v13 }
 0x256   :  { %920 = vrot.lane.b32.xlu1 %v919_v15, %s955_s4 }
 0x2c8   :  { %v921_v17 = vpop.permute.xlu1 %920 }
 0x2c9   :  { %v923_v21 = vunpack.i.h.bf16 %v921_v17  ;;  %v922_v22 = vunpack.i.l.bf16 %v921_v17 }
 0x2cb   :  { %v321_v23 = vsel %vm46_vm3, %v309_v16, %v922_v22  ;;  %v322_v24 = vsel %vm46_vm3, %v310_v18, %v923_v21 }
 0x2cc   :  { %815 = vmatprep.mubr.f32.mxu0 %v321_v23 }
 0x2cd   :  { %816 = vmatmul.mubr.f32.vlgmr.msra.gmra.mrb[4].mxu0 %v322_v24 }
 0x2ce   :  { %883 = vmatpush3.bf16.msra.mxu0 %v880_v12  ;;  %826 = vmatprep.mubr.msk.f32.mxu0 %vm44_vm0, %v1017_v0  ;;  %v553_v0 = vld [vmem:[%s1190_s7 + $0x10] sm:$0xff] }
 0x2cf   :  { %885 = vmatprep.subr.bf16.mxu0 %v884_v25 }
 0x2d2   :  { %887 = vmatpush3.bf16.msra.mxu0 %v884_v25 }
 0x2d5   :  { %827 = vmatmul.mubr.msk.f32.vlgmr.msra.gmra.mrb[4].mxu0 %vm44_vm0, %v1022_v1  ;;  %v892_v1 = vpack.c.bf16 %v554_v29, %v553_v0 }
 0x2d7   :  { %893 = vmatprep.subr.bf16.mxu1 %v892_v1 }
 0x2d8   :  { %895 = vmatpush3.bf16.msra.mxu1 %v892_v1 }
 0x2d9   :  { %897 = vmatprep.subr.bf16.mxu1 %v896_v32 }
 0x2dc   :  { %899 = vmatpush3.bf16.msra.mxu1 %v896_v32 }
 0x2dd   :  { %901 = vmatprep.subr.bf16.mxu1 %v900_v35 }
 0x2e0   :  { %903 = vmatpush3.bf16.msra.mxu1 %v900_v35 }
 0x3a8   :  { %v828_v36 = vpop.f32.mrb[4].mxu0 }
 0x3a9   :  { %v502_v37 = vsel %vm46_vm3, %v828_v36, 0.0  ;;  %v492_v38 = vpop.f32.mrb[5].mxu0 }
 0x3aa   :  { %v501_v39 = vsel %vm46_vm3, %v492_v38, 0.0 }
 0x3ab   :  { %v503_v40 = vadd.f32 %v502_v37, %v501_v39 }
 0x3ad   :  { %v504_v41 = vrot.slane %v503_v40, 4 }
 0x3af   :  { %v505_v42 = vadd.f32 %v504_v41, %v503_v40 }
 0x3b1   :  { %v506_v43 = vrot.slane %v505_v42, 2 }
 0x3b3   :  { %v507_v44 = vadd.f32 %v506_v43, %v505_v42  ;;  %v664_v43 = vld [vmem:[%s1191_s8] sm:$0x1]  ;;  %s928_s8 = scalar_lea.vmem %s697_s17, 256 }
 0x3b4   :  { %p929_p0 = scmp.ne.s32.totalorder %s697_s17, %s928_s8  ;;  %p934_p2 = scmp.lt.s32.totalorder %s928_s8, %s928_s8 }
 0x3b5   :  { %v508_v45 = vrot.slane %v507_v44, 1 }
 0x3b6   :  { %p935_p3 = por %p934_p2, %p933_p1 }
 0x3b7   :  { %v509_v46 = vadd.f32 %v508_v45, %v507_v44 }
 0x3b8   :  { %p936_p4 = pnand %p935_p3, %p929_p0 }
 0x3b9   :  { %v511_v47 = vmul.f32 0.0625, %v509_v46  ;;  %v668_v46 = vld [vmem:[%s1192_s9] sm:$0x1] }
 0x3bb   :  { %v512_v48 = vsub.f32 %v492_v38, %v511_v47  ;;  %v513_v49 = vsub.f32 %v828_v36, %v511_v47 }
 0x3bd   :  { %v514_v50 = vmul.f32 %v512_v48, %v512_v48  ;;  %v515_v51 = vmul.f32 %v513_v49, %v513_v49 }
 0x3bf   :  { %v516_v52 = vsel %vm46_vm3, %v514_v50, 0.0  ;;  %v517_v53 = vsel %vm46_vm3, %v515_v51, 0.0 }
 0x3c0   :  { %v518_v54 = vadd.f32 %v517_v53, %v516_v52 }
 0x3c2   :  { %v519_v55 = vrot.slane %v518_v54, 4 }
 0x3c4   :  { %v520_v56 = vadd.f32 %v519_v55, %v518_v54 }
 0x3c6   :  { %v521_v57 = vrot.slane %v520_v56, 2 }
 0x3c8   :  { %v522_v58 = vadd.f32 %v521_v57, %v520_v56 }
 0x3ca   :  { %v523_v59 = vrot.slane %v522_v58, 1 }
 0x3cc   :  { %v524_v60 = vadd.f32 %v523_v59, %v522_v58 }
 0x3ce   :  { %v525_v61 = vmul.f32 0.0625, %v524_v60 }
 0x3d0   :  { %v527_v62 = vadd.f32 1e-05, %v525_v61 }
 0x3d2   :  { %924 = vrsqrt.f32 %v527_v62 }
 0x3dc   :  { %v925_v5 = vpop.eup %924 }
 0x3dd   :  { %v529_v6 = vmul.f32 %v925_v5, %v526_v3 }
 0x3df   :  { %v531_v8 = vmul.f32 %v529_v6, %v511_v47  ;;  %v537_v9 = vrot.slane %v529_v6, %v536_v4 }
 0x3e1   :  { %v532_v10 = vsub.f32 %v530_v7, %v531_v8  ;;  %v539_v11 = vmul.f32 %v537_v9, %v492_v38  ;;  %v540_v12 = vmul.f32 %v828_v36, %v537_v9 }
 0x3e3   :  { %v545_v13 = vrot.slane %v532_v10, %v536_v4 }
 0x3e5   :  { %v547_v14 = vadd.f32 %v545_v13, %v539_v11  ;;  %v548_v15 = vadd.f32 %v545_v13, %v540_v12 }
 0x3e7   :  { %v549_v16 = vmax.f32 %v547_v14, 0.0  ;;  %v550_v17 = vmax.f32 %v548_v15, 0.0 }
 0x3e9   :  { %845 = vmatprep.mubr.msk.f32.mxu1 %vm46_vm3, %v549_v16 }
 0x3ea   :  { %846 = vmatmul.mubr.msk.f32.vlgmr.msra.gmra.mrb[12].mxu1 %vm46_vm3, %v550_v17 }
 0x4bd   :  { %v847_v18 = vpop.f32.mrb[12].mxu1 }
 0x4be   :  { %v641_v19 = vsel %vm44_vm0, %v847_v18, 0.0  ;;  %v631_v20 = vpop.f32.mrb[13].mxu1 }
 0x4bf   :  { %v640_v21 = vsel %vm44_vm0, %v631_v20, 0.0 }
 0x4c0   :  { %v642_v22 = vadd.f32 %v641_v19, %v640_v21 }
 0x4c2   :  { %v643_v23 = vrot.slane %v642_v22, 4 }
 0x4c4   :  { %v644_v24 = vadd.f32 %v643_v23, %v642_v22 }
 0x4c6   :  { %v645_v25 = vrot.slane %v644_v24, 2 }
 0x4c8   :  { %v646_v26 = vadd.f32 %v645_v25, %v644_v24 }
 0x4ca   :  { %v647_v27 = vrot.slane %v646_v26, 1 }
 0x4cc   :  { %v648_v28 = vadd.f32 %v647_v27, %v646_v26 }
 0x4ce   :  { %v649_v0 = vmul.f32 0.0625, %v648_v28 }
 0x4d0   :  { %v650_v29 = vsub.f32 %v631_v20, %v649_v0  ;;  %v651_v1 = vsub.f32 %v847_v18, %v649_v0 }
 0x4d2   :  { %v652_v30 = vmul.f32 %v650_v29, %v650_v29  ;;  %v653_v31 = vmul.f32 %v651_v1, %v651_v1 }
 0x4d4   :  { %v654_v32 = vsel %vm44_vm0, %v652_v30, 0.0  ;;  %v655_v33 = vsel %vm44_vm0, %v653_v31, 0.0 }
 0x4d5   :  { %v656_v34 = vadd.f32 %v655_v33, %v654_v32 }
 0x4d7   :  { %v657_v35 = vrot.slane %v656_v34, 4 }
 0x4d9   :  { %v658_v36 = vadd.f32 %v657_v35, %v656_v34 }
 0x4db   :  { %v659_v37 = vrot.slane %v658_v36, 2 }
 0x4dd   :  { %v660_v38 = vadd.f32 %v659_v37, %v658_v36 }
 0x4df   :  { %v661_v39 = vrot.slane %v660_v38, 1 }
 0x4e1   :  { %v662_v40 = vadd.f32 %v661_v39, %v660_v38 }
 0x4e3   :  { %v663_v41 = vmul.f32 0.0625, %v662_v40 }
 0x4e5   :  { %v665_v42 = vadd.f32 1e-05, %v663_v41 }
 0x4e7   :  { %926 = vrsqrt.f32 %v665_v42 }
 0x4f1   :  { %v927_v44 = vpop.eup %926 }
 0x4f2   :  { %v667_v45 = vmul.f32 %v927_v44, %v664_v43 }
 0x4f4   :  { %v669_v47 = vmul.f32 %v667_v45, %v649_v0  ;;  %v675_v48 = vrot.slane %v667_v45, %v536_v4 }
 0x4f6   :  { %v670_v49 = vsub.f32 %v668_v46, %v669_v47  ;;  %v677_v50 = vmul.f32 %v675_v48, %v631_v20  ;;  %v678_v51 = vmul.f32 %v847_v18, %v675_v48 }
 0x4f8   :  { %v683_v52 = vrot.slane %v670_v49, %v536_v4 }
 0x4fa   :  { %v685_v53 = vadd.f32 %v683_v52, %v677_v50  ;;  %v686_v54 = vadd.f32 %v683_v52, %v678_v51 }
 0x4fc   :  { %v687_v55 = vmax.f32 %v685_v53, 0.0  ;;  %v688_v56 = vmax.f32 %v686_v54, 0.0 }
 0x4fe   :  { %689 = vst.msk [vmem:[#allocation5] sm:$0xff] %vm44_vm0, %v687_v55  ;;  %690 = vst.msk [vmem:[#allocation5 + $0x8] sm:$0xff] %vm44_vm0, %v688_v56 }
 0x4ff   :  { %939 = shalt.err (!%p936_p4)
}
 0x500   :  { %s940_s19 = scalar_lea.hbm %s1193_s10, 256 }
 0x501   :  { %p941_p5 = scmp.ne.s32.totalorder %s1193_s10, %s940_s19  ;;  %p944_p6 = scmp.lt.u32.totalorder %s940_s19, %s1193_s10 }
 0x503   :  { %p946_p7 = pnand %p944_p6, %p941_p5 }
 0x505   :  { %949 = shalt.err (!%p946_p7)
}
 0x506   :  { %s957_s22 = smov 128   ;;  %s958_s23 = smov 8  }
 0x507   :  { %702 = dma.vmem_to_hbm [thread:$0]  %s697_s17, 256, %s1193_s10, [#allocation6], %s957_s22, %s957_s22, %s958_s23  }
 0x508   :  { %950 = dma.done.wait [#allocation6], 256  }
 0x509   :  { %951 = vsyncadd [#allocation6], 4294967040 }
 0x50a   :  { %706 = vsyncpa [#allocation6], 1 }

</bundles_post_ra>
